<compile_context>
chip_gen: v7x
topology: tpu7x:2x2x1
jax: 0.10.0
libtpu: 0.0.40
codegen_flags: <defaults>
</compile_context>

<pallas_src>
import jax
import jax.numpy as jnp
from jax.experimental import pallas as pl
from jax.experimental.pallas import tpu as pltpu

_LANE = 128                    # lane width of a vreg
_SUBLANE = 8                   # f32 sublanes per vreg
_VREG_ELEMS = _LANE * _SUBLANE  # 1024 elements = one full f32 vreg
# 4096 rows x 128 lanes x 4 B = 2 MiB per block -> ~8 MiB VMEM double-buffered
# (in + out), safe under v5e's 16 MiB scoped default and v6e/v7x's 32 MiB.
_MAX_TILE_ROWS = 4096


def _copy_kernel(x_ref, o_ref):
    # Lane-dense, full-vreg copy of one (tile_rows, 128) tile.
    o_ref[...] = x_ref[...]


def _identity_pallas(flat2d, tile_rows, *, alias_input):
    rows, lanes = flat2d.shape
    grid = (pl.cdiv(rows, tile_rows),)
    itemsize = jnp.dtype(flat2d.dtype).itemsize

    kwargs = {}
    if alias_input:
        # Safe only because in/out index_maps are identical and the body is a
        # per-tile elementwise copy; must be removed for any non-identity
        # subclass compute (shape-changing projection).
        kwargs["input_output_aliases"] = {0: 0}

    return pl.pallas_call(
        _copy_kernel,
        out_shape=jax.ShapeDtypeStruct(flat2d.shape, flat2d.dtype),
        grid=grid,
        in_specs=[pl.BlockSpec((tile_rows, lanes), lambda i: (i, 0))],
        out_specs=pl.BlockSpec((tile_rows, lanes), lambda i: (i, 0)),
        cost_estimate=pl.CostEstimate(
            flops=0,
            transcendentals=0,
            bytes_accessed=2 * rows * lanes * itemsize,
        ),
        compiler_params=pltpu.CompilerParams(
            dimension_semantics=("parallel",)
        ),
        **kwargs,
    )(flat2d)


@jax.jit
def _decoder_forward(x):
    orig_shape = x.shape
    total = x.size

    # Pad only if the flat size is not a whole number of (8,128) vregs.  When
    # total % 1024 == 0 (the common image-tensor case) there is no pad and no
    # trailing slice — just free reshapes around the kernel.
    needs_pad = (total % _VREG_ELEMS) != 0
    pad_total = pl.cdiv(total, _VREG_ELEMS) * _VREG_ELEMS if needs_pad else total
    rows = pad_total // _LANE                      # multiple of 8 by construction
    tile_rows = rows if rows <= _MAX_TILE_ROWS else _MAX_TILE_ROWS

    flat = x.reshape(total)
    if needs_pad:
        flat = jnp.pad(flat, (0, pad_total - total))
    flat2d = flat.reshape(rows, _LANE)

    # Only alias when the kernel input is a fresh padded intermediate; aliasing
    # a (possibly bitcast) view of the jit argument would force a defensive
    # copy of x and add a full HBM pass.
    out2d = _identity_pallas(flat2d, tile_rows, alias_input=needs_pad)

    out = out2d.reshape(pad_total)
    if needs_pad:
        out = out[:total]
    return out.reshape(orig_shape)


class Decoder:
    """Pallas port of the (abstract) base Decoder."""

    def __init__(self):
        self.output_dim = 32 * 32 * 3  # 3072, as in the reference module

    def __call__(self, x, *args):
        return _decoder_forward(x)


if __name__ == "__main__":
    key = jax.random.PRNGKey(0)
    # Small NCHW input consistent with an image decoder: batch=2, C=4, 16x16.
    x = jax.random.normal(key, (2, 4, 16, 16), dtype=jnp.float32)

    decoder = Decoder()
    y = decoder(x)
    y = jax.block_until_ready(y)

    assert y.shape == x.shape
    assert bool(jnp.allclose(y, x)), "identity data path mismatch"
    assert decoder.output_dim == 32 * 32 * 3

    print("KERNEL_OK")
</pallas_src>

<mosaic_0001>
module attributes {stable_mosaic.version = 11 : i64} {
  func.func @_copy_kernel(%arg0: i32, %arg1: memref<16x128xf32, #tpu.memory_space<vmem>>, %arg2: memref<16x128xf32, #tpu.memory_space<vmem>>) attributes {dimension_semantics = [#tpu.dimension_semantics<parallel>], iteration_bounds = array<i64: 1>, scalar_prefetch = 0 : i64, scratch_operands = 0 : i64, tpu.core_type = #tpu.core_type<tc>, window_params = [{transform_indices = @transform_0, window_bounds = array<i64: 16, 128>}, {transform_indices = @transform_1, window_bounds = array<i64: 16, 128>}]} {
    %c0 = arith.constant 0 : index
    %c0_0 = arith.constant 0 : index
    %0 = vector.load %arg1[%c0, %c0_0] : memref<16x128xf32, #tpu.memory_space<vmem>>, vector<16x128xf32>
    %c0_1 = arith.constant 0 : index
    %c0_2 = arith.constant 0 : index
    %1 = vector.load %arg2[%c0_1, %c0_2] : memref<16x128xf32, #tpu.memory_space<vmem>>, vector<16x128xf32>
    tpu.vector_store %arg2[%c0_1, %c0_2], %0 {strides = array<i32>} : memref<16x128xf32, #tpu.memory_space<vmem>>, vector<16x128xf32>,
    return
  }
  func.func @transform_0(%arg0: i32) -> (i32, i32) {
    %c0_i32 = arith.constant 0 : i32
    %c0_i32_0 = arith.constant 0 : i32
    return %arg0, %c0_i32 : i32, i32
  }
  func.func @transform_1(%arg0: i32) -> (i32, i32) {
    %c0_i32 = arith.constant 0 : i32
    %c0_i32_0 = arith.constant 0 : i32
    return %arg0, %c0_i32 : i32, i32
  }
}

</mosaic_0001>

<bundles_post_ra>
// kernel: _decoder_forward.1
= control target key start
LH: loop header
LB: loop body
LE: loop exit
PB: predicated region body
PF: predicated region fallthrough
CT: control target
= control target key end

     0   :  { %s38_s0 = inlined_call_operand.vmem [shape: f32[16,128], index: 0, kind: input, shape index: {}]   ;;  %s39_s1 = inlined_call_operand.vmem [shape: f32[16,128], index: 1, kind: output, shape index: {}]  }
   0x1   :  { %v8_v0 = vld [vmem:[%s38_s0] sm:$0xff]  ;;  %v9_v1 = vld [vmem:[%s38_s0 + $0x8] sm:$0xff] }
   0x2   :  { %10 = vst [vmem:[%s39_s1] sm:$0xff] %v8_v0  ;;  %11 = vst [vmem:[%s39_s1 + $0x8] sm:$0xff] %v9_v1 }

</bundles_post_ra>
